<compile_context>
chip_gen: v7x
topology: tpu7x:2x2x1
jax: 0.10.0
libtpu: 0.0.40
codegen_flags: <defaults>
</compile_context>

<pallas_src>
import functools

import jax
import jax.numpy as jnp
from jax.experimental import pallas as pl
from jax.experimental.pallas import tpu as pltpu

_LANE = 128
_SUBLANE_BF16 = 16      # bf16-native VMEM tile is (16, 128)
_TILE_B_MAX = 2048      # ~86% of HBM roofline per measured tiling data
_SPLIT_ROWS = 512       # above this, force 2 grid steps (dual-TC on v7x)


def _round_up(n, m):
    return ((n + m - 1) // m) * m


def _dqn_kernel(x_ref, w1_ref, b1_ref, w2_ref, b2_ref, o_ref):
    # fc1: x @ W1 (bf16 operands, f32 accumulation on the MXU) + b1, ReLU in f32.
    h = jnp.dot(x_ref[...], w1_ref[...], preferred_element_type=jnp.float32)
    h = jnp.maximum(h + b1_ref[...], 0.0)
    # out: h @ W2 + b2 (h cast back to bf16 for the MXU, accumulate in f32).
    y = jnp.dot(h.astype(w2_ref.dtype), w2_ref[...],
                preferred_element_type=jnp.float32)
    # Store bf16: halves output writeback bytes (kernel is bandwidth bound).
    o_ref[...] = (y + b2_ref[...]).astype(o_ref.dtype)


def prepare_dqn_params(w1, b1, w2, b2):
    """Pad feature dims to 128 lanes, cast matmul operands to bf16.

    Call ONCE per set of weights and reuse the result across forward calls,
    so the pad/cast never sits on the per-call hot path.
      w1: [in_states, h1]   b1: [1, h1]
      w2: [h1, out_actions] b2: [1, out_actions]
    """
    in_states, h1 = w1.shape
    out_actions = w2.shape[1]
    in_p = _round_up(in_states, _LANE)
    h1_p = _round_up(h1, _LANE)
    out_p = _round_up(out_actions, _LANE)

    w1p = jnp.zeros((in_p, h1_p), jnp.bfloat16).at[:in_states, :h1].set(
        w1.astype(jnp.bfloat16))
    b1p = jnp.zeros((1, h1_p), jnp.float32).at[:, :h1].set(
        b1.astype(jnp.float32))
    w2p = jnp.zeros((h1_p, out_p), jnp.bfloat16).at[:h1, :out_actions].set(
        w2.astype(jnp.bfloat16))
    b2p = jnp.zeros((1, out_p), jnp.float32).at[:, :out_actions].set(
        b2.astype(jnp.float32))
    return jax.device_put((w1p, b1p, w2p, b2p))


@functools.partial(jax.jit, static_argnames=("out_actions",))
def dqn_forward(x, w1p, b1p, w2p, b2p, *, out_actions):
    """DQN forward: relu(x @ w1 + b1) @ w2 + b2.

    x: [B, in_states] f32; padded params from prepare_dqn_params().
    Returns [B, out_actions] float32.
    """
    B, in_states = x.shape
    in_p, h1_p = w1p.shape
    out_p = w2p.shape[1]

    # ---- batch tiling: biggest tiles possible, at most 1-2 grid steps ----
    b16 = _round_up(B, _SUBLANE_BF16)
    num_steps = max(1, -(-b16 // _TILE_B_MAX))     # minimum steps at max tile
    if b16 >= _SPLIT_ROWS:
        # Force >=2 steps so dimension_semantics=("parallel",) can shard the
        # batch across both TensorCores on v7x; near-free on v5e/v6e.
        num_steps = max(num_steps, 2)
    tile_b = _round_up(-(-b16 // num_steps), _SUBLANE_BF16)
    b_p = tile_b * num_steps

    # Pad + bf16-cast x under jit so XLA fuses it with the kernel input.
    xp = jnp.zeros((b_p, in_p), jnp.bfloat16).at[:B, :in_states].set(
        x.astype(jnp.bfloat16))

    cost = pl.CostEstimate(
        flops=2 * b_p * (in_p * h1_p + h1_p * out_p),
        transcendentals=0,
        bytes_accessed=(xp.size * 2 + w1p.size * 2 + w2p.size * 2
                        + b1p.size * 4 + b2p.size * 4 + b_p * out_p * 2),
    )

    def const(shape):  # weights/biases: same block every step -> VMEM-resident
        return pl.BlockSpec(shape, lambda i: (0, 0))

    out = pl.pallas_call(
        _dqn_kernel,
        out_shape=jax.ShapeDtypeStruct((b_p, out_p), jnp.bfloat16),
        grid=(num_steps,),
        in_specs=[
            pl.BlockSpec((tile_b, in_p), lambda i: (i, 0)),  # activations: tiled
            const((in_p, h1_p)),
            const((1, h1_p)),
            const((h1_p, out_p)),
            const((1, out_p)),
        ],
        out_specs=pl.BlockSpec((tile_b, out_p), lambda i: (i, 0)),
        compiler_params=pltpu.CompilerParams(
            dimension_semantics=("parallel",)),
        cost_estimate=cost,
    )(xp, w1p, b1p, w2p, b2p)

    # Slice padding off; upcast the small result to f32 (PyTorch parity).
    return out[:B, :out_actions].astype(jnp.float32)


def _reference(x, w1, b1, w2, b2):
    h = jnp.maximum(x @ w1 + b1, 0.0)
    return h @ w2 + b2


if __name__ == "__main__":
    # Tic-tac-toe DQN sizes: 9 board states in, 32 hidden, 9 actions out.
    batch = 8
    in_states = 9
    h1_nodes = 32
    out_actions = 9

    key = jax.random.PRNGKey(0)
    kx, kw1, kb1, kw2, kb2, kx2 = jax.random.split(key, 6)

    x = jax.random.normal(kx, (batch, in_states), dtype=jnp.float32)
    w1 = jax.random.uniform(kw1, (in_states, h1_nodes), jnp.float32,
                            minval=-1.0, maxval=1.0) / jnp.sqrt(in_states)
    b1 = jax.random.uniform(kb1, (1, h1_nodes), jnp.float32,
                            minval=-1.0, maxval=1.0) / jnp.sqrt(in_states)
    w2 = jax.random.uniform(kw2, (h1_nodes, out_actions), jnp.float32,
                            minval=-1.0, maxval=1.0) / jnp.sqrt(h1_nodes)
    b2 = jax.random.uniform(kb2, (1, out_actions), jnp.float32,
                            minval=-1.0, maxval=1.0) / jnp.sqrt(h1_nodes)

    # Pad/cast weights ONCE; reused across both forward calls below.
    params = prepare_dqn_params(w1, b1, w2, b2)

    # Small-batch run (module-spec shapes): grid=(1,), 16-row bf16 tile.
    out = dqn_forward(x, *params, out_actions=out_actions)
    jax.block_until_ready(out)
    ref = _reference(x, w1, b1, w2, b2)
    assert out.shape == (batch, out_actions)
    # bf16 matmul operands + bf16 output store -> relaxed tolerance vs f32 ref.
    assert jnp.allclose(out, ref, atol=5e-2, rtol=5e-2), "small-batch mismatch"

    # Larger batch exercises the 2-step grid split (tile_b=256, grid=(2,)).
    big_b = 512
    xb = jax.random.normal(kx2, (big_b, in_states), dtype=jnp.float32)
    out_b = dqn_forward(xb, *params, out_actions=out_actions)
    jax.block_until_ready(out_b)
    ref_b = _reference(xb, w1, b1, w2, b2)
    assert out_b.shape == (big_b, out_actions)
    assert jnp.allclose(out_b, ref_b, atol=5e-2, rtol=5e-2), "tiled-batch mismatch"

    print("KERNEL_OK")
</pallas_src>

<mosaic_0001>
module attributes {stable_mosaic.version = 11 : i64} {
  func.func @_dqn_kernel(%arg0: i32, %arg1: memref<16x128xbf16, #tpu.memory_space<vmem>>, %arg2: memref<128x128xbf16, #tpu.memory_space<vmem>>, %arg3: memref<1x128xf32, #tpu.memory_space<vmem>>, %arg4: memref<128x128xbf16, #tpu.memory_space<vmem>>, %arg5: memref<1x128xf32, #tpu.memory_space<vmem>>, %arg6: memref<16x128xbf16, #tpu.memory_space<vmem>>) attributes {dimension_semantics = [#tpu.dimension_semantics<parallel>], iteration_bounds = array<i64: 1>, scalar_prefetch = 0 : i64, scratch_operands = 0 : i64, tpu.core_type = #tpu.core_type<tc>, window_params = [{transform_indices = @transform_0, window_bounds = array<i64: 16, 128>}, {pipeline_mode = #tpu.pipeline_mode<synchronous>, transform_indices = @transform_1, window_bounds = array<i64: 128, 128>}, {pipeline_mode = #tpu.pipeline_mode<synchronous>, transform_indices = @transform_2, window_bounds = array<i64: 1, 128>}, {pipeline_mode = #tpu.pipeline_mode<synchronous>, transform_indices = @transform_3, window_bounds = array<i64: 128, 128>}, {pipeline_mode = #tpu.pipeline_mode<synchronous>, transform_indices = @transform_4, window_bounds = array<i64: 1, 128>}, {transform_indices = @transform_5, window_bounds = array<i64: 16, 128>}]} {
    %c0 = arith.constant 0 : index
    %c0_0 = arith.constant 0 : index
    %0 = vector.load %arg1[%c0, %c0_0] : memref<16x128xbf16, #tpu.memory_space<vmem>>, vector<16x128xbf16>
    %c0_1 = arith.constant 0 : index
    %c0_2 = arith.constant 0 : index
    %1 = vector.load %arg2[%c0_1, %c0_2] : memref<128x128xbf16, #tpu.memory_space<vmem>>, vector<128x128xbf16>
    %cst = arith.constant dense<0.000000e+00> : vector<16x128xf32>
    %2 = tpu.matmul %0, %1, %cst {dimension_numbers = #tpu.dot_dimension_numbers<[1], [0], [0], [1], [0, 0, 1, 1], [], []>} : vector<16x128xbf16>, vector<128x128xbf16>, vector<16x128xf32> -> vector<16x128xf32>
    %c0_3 = arith.constant 0 : index
    %c0_4 = arith.constant 0 : index
    %3 = vector.load %arg3[%c0_3, %c0_4] : memref<1x128xf32, #tpu.memory_space<vmem>>, vector<1x128xf32>
    %4 = vector.broadcast %3 : vector<1x128xf32> to vector<16x128xf32>
    %5 = arith.addf %2, %4 : vector<16x128xf32>
    %cst_5 = arith.constant 0.000000e+00 : f32
    %6 = vector.broadcast %cst_5 : f32 to vector<16x128xf32>
    %7 = arith.maximumf %5, %6 : vector<16x128xf32>
    %8 = arith.truncf %7 : vector<16x128xf32> to vector<16x128xbf16>
    %c0_6 = arith.constant 0 : index
    %c0_7 = arith.constant 0 : index
    %9 = vector.load %arg4[%c0_6, %c0_7] : memref<128x128xbf16, #tpu.memory_space<vmem>>, vector<128x128xbf16>
    %cst_8 = arith.constant dense<0.000000e+00> : vector<16x128xf32>
    %10 = tpu.matmul %8, %9, %cst_8 {dimension_numbers = #tpu.dot_dimension_numbers<[1], [0], [0], [1], [0, 0, 1, 1], [], []>} : vector<16x128xbf16>, vector<128x128xbf16>, vector<16x128xf32> -> vector<16x128xf32>
    %c0_9 = arith.constant 0 : index
    %c0_10 = arith.constant 0 : index
    %11 = vector.load %arg5[%c0_9, %c0_10] : memref<1x128xf32, #tpu.memory_space<vmem>>, vector<1x128xf32>
    %12 = vector.broadcast %11 : vector<1x128xf32> to vector<16x128xf32>
    %13 = arith.addf %10, %12 : vector<16x128xf32>
    %14 = arith.truncf %13 : vector<16x128xf32> to vector<16x128xbf16>
    %c0_11 = arith.constant 0 : index
    %c0_12 = arith.constant 0 : index
    %15 = vector.load %arg6[%c0_11, %c0_12] : memref<16x128xbf16, #tpu.memory_space<vmem>>, vector<16x128xbf16>
    tpu.vector_store %arg6[%c0_11, %c0_12], %14 {strides = array<i32>} : memref<16x128xbf16, #tpu.memory_space<vmem>>, vector<16x128xbf16>,
    return
  }
  func.func @transform_0(%arg0: i32) -> (i32, i32) {
    %c0_i32 = arith.constant 0 : i32
    %c0_i32_0 = arith.constant 0 : i32
    return %arg0, %c0_i32 : i32, i32
  }
  func.func @transform_1(%arg0: i32) -> (i32, i32) {
    %c0_i32 = arith.constant 0 : i32
    %c0_i32_0 = arith.constant 0 : i32
    %c0_i32_1 = arith.constant 0 : i32
    return %c0_i32, %c0_i32_0 : i32, i32
  }
  func.func @transform_2(%arg0: i32) -> (i32, i32) {
    %c0_i32 = arith.constant 0 : i32
    %c0_i32_0 = arith.constant 0 : i32
    %c0_i32_1 = arith.constant 0 : i32
    return %c0_i32, %c0_i32_0 : i32, i32
  }
  func.func @transform_3(%arg0: i32) -> (i32, i32) {
    %c0_i32 = arith.constant 0 : i32
    %c0_i32_0 = arith.constant 0 : i32
    %c0_i32_1 = arith.constant 0 : i32
    return %c0_i32, %c0_i32_0 : i32, i32
  }
  func.func @transform_4(%arg0: i32) -> (i32, i32) {
    %c0_i32 = arith.constant 0 : i32
    %c0_i32_0 = arith.constant 0 : i32
    %c0_i32_1 = arith.constant 0 : i32
    return %c0_i32, %c0_i32_0 : i32, i32
  }
  func.func @transform_5(%arg0: i32) -> (i32, i32) {
    %c0_i32 = arith.constant 0 : i32
    %c0_i32_0 = arith.constant 0 : i32
    return %arg0, %c0_i32 : i32, i32
  }
}

</mosaic_0001>

<bundles_post_ra>
// kernel: dqn_forward.1
= control target key start
LH: loop header
LB: loop body
LE: loop exit
PB: predicated region body
PF: predicated region fallthrough
CT: control target
= control target key end

     0   :  { %10 = vsyncpa [#allocation3], 0  ;;  %s529_s0 = inlined_call_operand.vmem [shape: bf16[16,128], index: 0, kind: input, shape index: {}]   ;;  %s530_s1 = inlined_call_operand.hbm [shape: bf16[128,128], index: 1, kind: input, shape index: {}]   ;;  %s531_s2 = inlined_call_operand.vmem [shape: f32[1,128], index: 2, kind: input, shape index: {}]   ;;  %s532_s3 = inlined_call_operand.hbm [shape: bf16[128,128], index: 3, kind: input, shape index: {}]   ;;  %s533_s4 = inlined_call_operand.vmem [shape: f32[1,128], index: 4, kind: input, shape index: {}]   ;;  %s534_s5 = inlined_call_operand.vmem [shape: bf16[16,128], index: 5, kind: output, shape index: {}]  }
   0x1   :  { %11 = vsyncpa [#allocation5], 0  ;;  %s457_s18 = smov [#allocation2]   ;;  %s409_s22 = scalar_lea.hbm %s530_s1, 1024 }
   0x2   :  { %s19_s19 = sshll.u32 %s457_s18, 4  ;;  %p410_p0 = scmp.ne.s32.totalorder %s530_s1, %s409_s22  ;;  %s20_s19 = int_to_ptr.vmem [resolvable:$true] %s19_s19 }
   0x3   :  { %p413_p1 = scmp.lt.u32.totalorder %s409_s22, %s530_s1 }
   0x5   :  { %p415_p2 = pnand %p413_p1, %p410_p0 }
   0x7   :  { %418 = shalt.err (!%p415_p2)
}
   0x8   :  { %s419_s27 = scalar_lea.vmem %s20_s19, 1024  ;;  %p424_p4 = scmp.lt.s32.totalorder %s20_s19, %s20_s19 }
   0x9   :  { %p420_p3 = scmp.ne.s32.totalorder %s20_s19, %s419_s27  ;;  %p425_p5 = scmp.lt.s32.totalorder %s419_s27, %s419_s27 }
   0xb   :  { %p426_p6 = por %p425_p5, %p424_p4 }
   0xd   :  { %p427_p7 = pnand %p426_p6, %p420_p3 }
   0xf   :  { %430 = shalt.err (!%p427_p7)
}
  0x10   :  { %s458_s28 = smov 64   ;;  %s459_s29 = smov 4  }
  0x11   :  { %25 = dma.hbm_to_vmem [thread:$0]  %s530_s1, 1024, %s20_s19, [#allocation3], %s458_s28, %s458_s28, %s459_s29  }
  0x12   :  { %s460_s7 = smov [#allocation4]   ;;  %s431_s11 = scalar_lea.hbm %s532_s3, 1024 }
  0x13   :  { %s33_s8 = sshll.u32 %s460_s7, 4  ;;  %p432_p8 = scmp.ne.s32.totalorder %s532_s3, %s431_s11  ;;  %s34_s8 = int_to_ptr.vmem [resolvable:$true] %s33_s8 }
  0x14   :  { %p435_p9 = scmp.lt.u32.totalorder %s431_s11, %s532_s3 }
  0x16   :  { %p437_p10 = pnand %p435_p9, %p432_p8 }
  0x18   :  { %440 = shalt.err (!%p437_p10)
}
  0x19   :  { %s441_s16 = scalar_lea.vmem %s34_s8, 1024  ;;  %p446_p12 = scmp.lt.s32.totalorder %s34_s8, %s34_s8 }
  0x1a   :  { %p442_p11 = scmp.ne.s32.totalorder %s34_s8, %s441_s16  ;;  %p447_p13 = scmp.lt.s32.totalorder %s441_s16, %s441_s16 }
  0x1c   :  { %p448_p0 = por %p447_p13, %p446_p12 }
  0x1e   :  { %p449_p1 = pnand %p448_p0, %p442_p11 }
  0x20   :  { %452 = shalt.err (!%p449_p1)
}
  0x21   :  { %39 = dma.hbm_to_vmem [thread:$0]  %s532_s3, 1024, %s34_s8, [#allocation5], %s458_s28, %s458_s28, %s459_s29  }
  0x22   :  { %453 = dma.done.wait [#allocation3], 1024  }
  0x23   :  { %454 = vsyncadd [#allocation3], 4294966272 }
  0x24   :  { %455 = dma.done.wait [#allocation5], 1024  }
  0x25   :  { %456 = vsyncadd [#allocation5], 4294966272  ;;  %v461_v0 = vmov 0.0   ;;  %vm462_vm0 = vmmov 0   ;;  %v392_v1 = vld [vmem:[#allocation2] sm:$0xff]   ;;  %v393_v2 = vld [vmem:[#allocation2 + $0x8] sm:$0xff]  }
  0x26   :  { %346 = vmatprep.subr.bf16.mxu0 %v461_v0  ;;  %362 = vmatprep.mubr.msk.bf16.mxu0 %vm462_vm0, %v461_v0  ;;  %v394_v3 = vld [vmem:[#allocation2 + $0x10] sm:$0xff]   ;;  %v401_v4 = vld [vmem:[#allocation4] sm:$0xff]   ;;  %v395_v5 = vld [vmem:[#allocation2 + $0x18] sm:$0xff]  }
  0x27   :  { %366 = vmatprep.subr.bf16.mxu1 %v461_v0  ;;  %382 = vmatprep.mubr.msk.bf16.mxu1 %vm462_vm0, %v461_v0  ;;  %v402_v6 = vld [vmem:[#allocation4 + $0x8] sm:$0xff]   ;;  %v396_v7 = vld [vmem:[#allocation2 + $0x20] sm:$0xff]   ;;  %v403_v8 = vld [vmem:[#allocation4 + $0x10] sm:$0xff]  }
  0x28   :  { %347 = vmatpush3.bf16.msra.mxu0 %v392_v1  ;;  %367 = vmatpush3.bf16.msra.mxu1 %v401_v4  ;;  %v397_v9 = vld [vmem:[#allocation2 + $0x28] sm:$0xff]   ;;  %v404_v10 = vld [vmem:[#allocation4 + $0x18] sm:$0xff]   ;;  %v398_v11 = vld [vmem:[#allocation2 + $0x30] sm:$0xff]  }
  0x29   :  { %348 = vmatprep.subr.bf16.mxu0 %v461_v0  ;;  %368 = vmatprep.subr.bf16.mxu1 %v461_v0  ;;  %v405_v12 = vld [vmem:[#allocation4 + $0x20] sm:$0xff]   ;;  %v399_v13 = vld [vmem:[#allocation2 + $0x38] sm:$0xff]   ;;  %v406_v14 = vld [vmem:[#allocation4 + $0x28] sm:$0xff]  }
  0x2a   :  { %v400_v15 = vld [vmem:[%s529_s0] sm:$0xff]   ;;  %v407_v16 = vld [vmem:[#allocation4 + $0x30] sm:$0xff]   ;;  %v408_v17 = vld [vmem:[#allocation4 + $0x38] sm:$0xff]  }
  0x2b   :  { %v300_v18 = vld [vmem:[%s531_s2] ss:$0 sm:$0xff] }
  0x2c   :  { %349 = vmatpush3.bf16.msra.mxu0 %v393_v2  ;;  %369 = vmatpush3.bf16.msra.mxu1 %v402_v6  ;;  %v310_v28 = vld [vmem:[%s533_s4] ss:$0 sm:$0xff] }
  0x2d   :  { %350 = vmatprep.subr.bf16.mxu0 %v461_v0  ;;  %370 = vmatprep.subr.bf16.mxu1 %v461_v0 }
  0x30   :  { %351 = vmatpush3.bf16.msra.mxu0 %v394_v3  ;;  %371 = vmatpush3.bf16.msra.mxu1 %v403_v8 }
  0x31   :  { %352 = vmatprep.subr.bf16.mxu0 %v461_v0  ;;  %372 = vmatprep.subr.bf16.mxu1 %v461_v0 }
  0x34   :  { %353 = vmatpush3.bf16.msra.mxu0 %v395_v5  ;;  %373 = vmatpush3.bf16.msra.mxu1 %v404_v10 }
  0x35   :  { %354 = vmatprep.subr.bf16.mxu0 %v461_v0  ;;  %374 = vmatprep.subr.bf16.mxu1 %v461_v0 }
  0x38   :  { %355 = vmatpush3.bf16.msra.mxu0 %v396_v7  ;;  %375 = vmatpush3.bf16.msra.mxu1 %v405_v12 }
  0x39   :  { %356 = vmatprep.subr.bf16.mxu0 %v461_v0  ;;  %376 = vmatprep.subr.bf16.mxu1 %v461_v0 }
  0x3c   :  { %357 = vmatpush3.bf16.msra.mxu0 %v397_v9  ;;  %377 = vmatpush3.bf16.msra.mxu1 %v406_v14 }
  0x3d   :  { %358 = vmatprep.subr.bf16.mxu0 %v461_v0  ;;  %378 = vmatprep.subr.bf16.mxu1 %v461_v0 }
  0x40   :  { %359 = vmatpush3.bf16.msra.mxu0 %v398_v11  ;;  %379 = vmatpush3.bf16.msra.mxu1 %v407_v16 }
  0x41   :  { %360 = vmatprep.subr.bf16.mxu0 %v461_v0  ;;  %380 = vmatprep.subr.bf16.mxu1 %v461_v0 }
  0x44   :  { %361 = vmatpush3.bf16.msra.mxu0 %v399_v13  ;;  %381 = vmatpush3.bf16.msra.mxu1 %v408_v17 }
  0x47   :  { %363 = vmatmul.mubr.bf16.vlgmr.msra.gmra.mrb[0].mxu0 %v400_v15 }
 0x11a   :  { %v162_v19 = vpop.f32.mrb[0].mxu0 }
 0x11b   :  { %v163_v20 = vadd.f32 %v300_v18, %v162_v19  ;;  %v364_v21 = vpop.f32.mrb[1].mxu0 }
 0x11c   :  { %v165_v22 = vpop.f32.mrb[2].mxu0 }
 0x11d   :  { %v166_v23 = vadd.f32 %v300_v18, %v165_v22  ;;  %v365_v24 = vpop.f32.mrb[3].mxu0  ;;  %v169_v25 = vmax.f32 %v163_v20, 0.0 }
 0x11f   :  { %v170_v26 = vmax.f32 %v166_v23, 0.0 }
 0x121   :  { %v171_v27 = vpack.c.bf16 %v170_v26, %v169_v25 }
 0x123   :  { %383 = vmatmul.mubr.bf16.vlgmr.msra.gmra.mrb[0].mxu1 %v171_v27 }
 0x1f6   :  { %v277_v29 = vpop.f32.mrb[0].mxu1 }
 0x1f7   :  { %v384_v30 = vpop.f32.mrb[1].mxu1  ;;  %v278_v32 = vadd.f32 %v310_v28, %v277_v29 }
 0x1f8   :  { %v280_v31 = vpop.f32.mrb[2].mxu1 }
 0x1f9   :  { %v281_v33 = vadd.f32 %v310_v28, %v280_v31  ;;  %v385_v34 = vpop.f32.mrb[3].mxu1 }
 0x1fb   :  { %v326_v35 = vpack.c.bf16 %v281_v33, %v278_v32 }
 0x1fd   :  { %327 = vst [vmem:[%s534_s5] sm:$0xff] %v326_v35  }
 0x1fe   :  { %298 = vsyncpa [#allocation3], 1 }
 0x1ff   :  { %299 = vsyncpa [#allocation5], 1 }

</bundles_post_ra>
